<compile_context>
chip_gen: v7x
topology: tpu7x:2x2x1
jax: 0.10.0
libtpu: 0.0.40
codegen_flags: <defaults>
</compile_context>

<pallas_src>
import jax
import jax.numpy as jnp
from jax.experimental import pallas as pl
from jax.experimental.pallas import tpu as pltpu

_TARGET_BLOCK_BYTES = 4 * 1024 * 1024
_VMEM_LIMIT_BYTES = 32 * 1024 * 1024


# --------------------------------------------------------------------------
# Kernels
# --------------------------------------------------------------------------
def _bn_stats_kernel(x_ref, sum_ref, sumsq_ref, acc_sum, acc_sq):
    """Accumulate per-channel partial sums / sums-of-squares over tiles."""
    i, j = pl.program_id(0), pl.program_id(1)

    @pl.when((i == 0) & (j == 0))
    def _init():
        acc_sum[...] = jnp.zeros_like(acc_sum)
        acc_sq[...] = jnp.zeros_like(acc_sq)

    x = x_ref[...].astype(jnp.float32)            # (TN, C, THW)
    # Cheap VPU vreg adds over the batch-tile axis; keep (C, THW) partials so
    # the expensive cross-lane reduce happens only once, in finalize.
    acc_sum[...] += jnp.sum(x, axis=0)
    acc_sq[...] += jnp.sum(x * x, axis=0)

    @pl.when((i == pl.num_programs(0) - 1) & (j == pl.num_programs(1) - 1))
    def _finalize():
        sum_ref[...] = jnp.sum(acc_sum[...], axis=-1, keepdims=True)   # (C, 1)
        sumsq_ref[...] = jnp.sum(acc_sq[...], axis=-1, keepdims=True)  # (C, 1)


def _bn_norm_kernel(x_ref, scale_ref, shift_ref, y_ref):
    """y = x * scale + shift with per-channel (C, 1) scale/shift."""
    y_ref[...] = (x_ref[...] * scale_ref[...] + shift_ref[...]).astype(y_ref.dtype)


# --------------------------------------------------------------------------
# Wrapper
# --------------------------------------------------------------------------
def _pick_tiles(n, c, hw, elem_bytes, target_bytes=_TARGET_BLOCK_BYTES):
    """Pick (TN, THW) such that the (TN, C, THW) block is lane-aligned,
    divides the array evenly, and stays within the target block size."""
    if hw % 128 == 0:
        max_lane = min(hw, max(128, target_bytes // max(1, c * elem_bytes)))
        thw = 128
        for d in range(hw // 128, 0, -1):
            t = d * 128
            if hw % t == 0 and t <= max_lane:
                thw = t
                break
    else:
        thw = hw  # full extent also satisfies the (8, 128) rule
    block_bytes = c * thw * elem_bytes
    tn = 1
    for d in range(n, 0, -1):
        if n % d == 0 and d * block_bytes <= target_bytes:
            tn = d
            break
    return tn, thw


def sync_batch_norm_forward(x, weight, bias, running_mean, running_var, *,
                            training=True, track_running_stats=True,
                            momentum=0.1, eps=1e-5, num_batches_tracked=0,
                            axis_name=None,
                            block_bytes=_TARGET_BLOCK_BYTES):
    """Forward of SyncBatchNorm / _BatchNorm for (N, C, *spatial) inputs.

    Returns (y, new_running_mean, new_running_var, new_num_batches_tracked).
    """
    orig_shape = x.shape
    N, C = orig_shape[0], orig_shape[1]
    HW = 1
    for d in orig_shape[2:]:
        HW *= d
    x3 = x.reshape(N, C, HW)                       # free view — no transpose
    elem_bytes = jnp.dtype(x.dtype).itemsize
    TN, THW = _pick_tiles(N, C, HW, elem_bytes, block_bytes)
    grid = (N // TN, HW // THW)

    x_spec = pl.BlockSpec((TN, C, THW), lambda i, j: (i, 0, j))
    vec_spec = pl.BlockSpec((C, 1), lambda i, j: (0, 0))

    w = weight.astype(jnp.float32) if weight is not None else jnp.ones((C,), jnp.float32)
    b = bias.astype(jnp.float32) if bias is not None else jnp.zeros((C,), jnp.float32)

    use_batch_stats = training or (not track_running_stats)
    new_rm, new_rv, new_nbt = running_mean, running_var, num_batches_tracked

    if use_batch_stats:
        s, ss = pl.pallas_call(
            _bn_stats_kernel,
            grid=grid,
            in_specs=[x_spec],
            out_specs=(vec_spec, vec_spec),
            out_shape=(jax.ShapeDtypeStruct((C, 1), jnp.float32),
                       jax.ShapeDtypeStruct((C, 1), jnp.float32)),
            scratch_shapes=[pltpu.VMEM((C, THW), jnp.float32),
                            pltpu.VMEM((C, THW), jnp.float32)],
            compiler_params=pltpu.CompilerParams(
                dimension_semantics=("arbitrary", "arbitrary"),
                vmem_limit_bytes=_VMEM_LIMIT_BYTES),
        )(x3)
        s, ss = s[:, 0], ss[:, 0]
        count = jnp.asarray(N * HW, jnp.float32)
        if axis_name is not None:
            # SyncBatchNorm: all-reduce stats across the process group.
            s = jax.lax.psum(s, axis_name)
            ss = jax.lax.psum(ss, axis_name)
            count = jax.lax.psum(count, axis_name)
        mean = s / count
        var = jnp.maximum(ss / count - mean * mean, 0.0)   # biased variance

        if training and track_running_stats and running_mean is not None:
            new_nbt = num_batches_tracked + 1
            eaf = (1.0 / float(new_nbt)) if momentum is None else momentum
            unbiased = var * (count / jnp.maximum(count - 1.0, 1.0))
            new_rm = (1.0 - eaf) * running_mean.astype(jnp.float32) + eaf * mean
            new_rv = (1.0 - eaf) * running_var.astype(jnp.float32) + eaf * unbiased
        mean_use, var_use = mean, var
    else:
        mean_use = running_mean.astype(jnp.float32)
        var_use = running_var.astype(jnp.float32)

    # Fold normalization + affine into a per-channel scale/shift (tiny O(C)
    # glue), so the memory-bound kernel body is one multiply-add per element.
    scale = w * jax.lax.rsqrt(var_use + eps)
    shift = b - mean_use * scale

    y3 = pl.pallas_call(
        _bn_norm_kernel,
        grid=grid,
        in_specs=[x_spec, vec_spec, vec_spec],
        out_specs=x_spec,
        out_shape=jax.ShapeDtypeStruct((N, C, HW), x.dtype),
        compiler_params=pltpu.CompilerParams(
            dimension_semantics=("parallel", "parallel"),
            vmem_limit_bytes=_VMEM_LIMIT_BYTES),
    )(x3, scale.reshape(C, 1), shift.reshape(C, 1))

    return y3.reshape(orig_shape), new_rm, new_rv, new_nbt


# --------------------------------------------------------------------------
# Reference + test
# --------------------------------------------------------------------------
def _reference_norm(x, mean, var, weight, bias, eps):
    m = mean.reshape(1, -1, 1, 1)
    v = var.reshape(1, -1, 1, 1)
    w = weight.reshape(1, -1, 1, 1)
    b = bias.reshape(1, -1, 1, 1)
    return ((x.astype(jnp.float32) - m) * jax.lax.rsqrt(v + eps) * w + b).astype(x.dtype)


if __name__ == "__main__":
    key = jax.random.PRNGKey(0)
    eps, momentum = 1e-5, 0.1

    # ----- main test: (2, 4, 16, 16), single-tile grid -----
    N, C, H, W = 2, 4, 16, 16
    x = jax.random.normal(key, (N, C, H, W), dtype=jnp.float32) * 2.0 + 0.5

    # _BatchNorm.reset_parameters(): weight=1, bias=0, running_mean=0,
    # running_var=1, num_batches_tracked=0 (deterministic init).
    weight = jnp.ones((C,), jnp.float32)
    bias = jnp.zeros((C,), jnp.float32)
    running_mean = jnp.zeros((C,), jnp.float32)
    running_var = jnp.ones((C,), jnp.float32)

    y_train, new_rm, new_rv, nbt = sync_batch_norm_forward(
        x, weight, bias, running_mean, running_var,
        training=True, track_running_stats=True, momentum=momentum, eps=eps)
    jax.block_until_ready(y_train)

    y_eval, _, _, _ = sync_batch_norm_forward(
        x, weight, bias, new_rm, new_rv,
        training=False, track_running_stats=True, momentum=momentum, eps=eps,
        num_batches_tracked=nbt)
    jax.block_until_ready(y_eval)

    xf = x.astype(jnp.float32)
    bmean = jnp.mean(xf, axis=(0, 2, 3))
    bvar = jnp.var(xf, axis=(0, 2, 3))
    n_el = N * H * W
    ref_rm = (1 - momentum) * running_mean + momentum * bmean
    ref_rv = (1 - momentum) * running_var + momentum * bvar * (n_el / (n_el - 1))

    assert jnp.allclose(y_train, _reference_norm(x, bmean, bvar, weight, bias, eps),
                        atol=1e-4, rtol=1e-4)
    assert jnp.allclose(new_rm, ref_rm, atol=1e-5, rtol=1e-5)
    assert jnp.allclose(new_rv, ref_rv, atol=1e-5, rtol=1e-5)
    assert jnp.allclose(y_eval, _reference_norm(x, ref_rm, ref_rv, weight, bias, eps),
                        atol=1e-4, rtol=1e-4)
    assert nbt == 1

    # ----- second test: force a multi-step grid to exercise the pl.when
    #       init/accumulate/finalize path of the stats kernel -----
    N2, C2, H2, W2 = 2, 4, 16, 64
    x2 = jax.random.normal(jax.random.PRNGKey(1), (N2, C2, H2, W2), jnp.float32) - 0.3
    y2, _, _, _ = sync_batch_norm_forward(
        x2, jnp.ones((C2,), jnp.float32), jnp.zeros((C2,), jnp.float32),
        jnp.zeros((C2,), jnp.float32), jnp.ones((C2,), jnp.float32),
        training=True, track_running_stats=True, momentum=momentum, eps=eps,
        block_bytes=2048)  # tiny block budget -> grid = (2, 8)
    jax.block_until_ready(y2)
    m2 = jnp.mean(x2.astype(jnp.float32), axis=(0, 2, 3))
    v2 = jnp.var(x2.astype(jnp.float32), axis=(0, 2, 3))
    assert jnp.allclose(
        y2, _reference_norm(x2, m2, v2, jnp.ones((C2,)), jnp.zeros((C2,)), eps),
        atol=1e-4, rtol=1e-4)

    print("KERNEL_OK")
</pallas_src>

<mosaic_0001>
module attributes {stable_mosaic.version = 11 : i64} {
  func.func @_bn_stats_kernel(%arg0: i32, %arg1: i32, %arg2: memref<2x4x256xf32, #tpu.memory_space<vmem>>, %arg3: memref<4x1xf32, #tpu.memory_space<vmem>>, %arg4: memref<4x1xf32, #tpu.memory_space<vmem>>, %arg5: memref<4x256xf32, #tpu.memory_space<vmem>>, %arg6: memref<4x256xf32, #tpu.memory_space<vmem>>) attributes {dimension_semantics = [#tpu.dimension_semantics<arbitrary>, #tpu.dimension_semantics<arbitrary>], iteration_bounds = array<i64: 1, 1>, scalar_prefetch = 0 : i64, scratch_operands = 2 : i64, tpu.core_type = #tpu.core_type<tc>, window_params = [{transform_indices = @transform_0, window_bounds = array<i64: 2, 4, 256>}, {pipeline_mode = #tpu.pipeline_mode<synchronous>, transform_indices = @transform_1, window_bounds = array<i64: 4, 1>}, {pipeline_mode = #tpu.pipeline_mode<synchronous>, transform_indices = @transform_2, window_bounds = array<i64: 4, 1>}]} {
    %c0_i32 = arith.constant 0 : i32
    %0 = arith.cmpi eq, %arg0, %c0_i32 : i32
    %c0_i32_0 = arith.constant 0 : i32
    %1 = arith.cmpi eq, %arg1, %c0_i32_0 : i32
    %2 = arith.andi %0, %1 : i1
    %3 = arith.extui %2 : i1 to i32
    %c0_i32_1 = arith.constant 0 : i32
    %4 = arith.cmpi ne, %3, %c0_i32_1 : i32
    scf.if %4 {
      %cst_16 = arith.constant 0.000000e+00 : f32
      %20 = vector.broadcast %cst_16 : f32 to vector<4x256xf32>
      %c0_17 = arith.constant 0 : index
      %c0_18 = arith.constant 0 : index
      %21 = vector.load %arg5[%c0_17, %c0_18] : memref<4x256xf32, #tpu.memory_space<vmem>>, vector<4x256xf32>
      tpu.vector_store %arg5[%c0_17, %c0_18], %20 {strides = array<i32>} : memref<4x256xf32, #tpu.memory_space<vmem>>, vector<4x256xf32>,
      %cst_19 = arith.constant 0.000000e+00 : f32
      %22 = vector.broadcast %cst_19 : f32 to vector<4x256xf32>
      %c0_20 = arith.constant 0 : index
      %c0_21 = arith.constant 0 : index
      %23 = vector.load %arg6[%c0_20, %c0_21] : memref<4x256xf32, #tpu.memory_space<vmem>>, vector<4x256xf32>
      tpu.vector_store %arg6[%c0_20, %c0_21], %22 {strides = array<i32>} : memref<4x256xf32, #tpu.memory_space<vmem>>, vector<4x256xf32>,
    } else {
    }
    %c0 = arith.constant 0 : index
    %c0_2 = arith.constant 0 : index
    %c0_3 = arith.constant 0 : index
    %5 = vector.load %arg2[%c0, %c0_2, %c0_3] : memref<2x4x256xf32, #tpu.memory_space<vmem>>, vector<2x4x256xf32>
    %c0_4 = arith.constant 0 : index
    %c0_5 = arith.constant 0 : index
    %6 = vector.load %arg5[%c0_4, %c0_5] : memref<4x256xf32, #tpu.memory_space<vmem>>, vector<4x256xf32>
    %cst = arith.constant dense<0.000000e+00> : vector<4x256xf32>
    %7 = vector.multi_reduction <add>, %5, %cst [0] : vector<2x4x256xf32> to vector<4x256xf32>
    %8 = arith.addf %6, %7 : vector<4x256xf32>
    %c0_6 = arith.constant 0 : index
    %c0_7 = arith.constant 0 : index
    %9 = vector.load %arg5[%c0_6, %c0_7] : memref<4x256xf32, #tpu.memory_space<vmem>>, vector<4x256xf32>
    tpu.vector_store %arg5[%c0_6, %c0_7], %8 {strides = array<i32>} : memref<4x256xf32, #tpu.memory_space<vmem>>, vector<4x256xf32>,
    %c0_8 = arith.constant 0 : index
    %c0_9 = arith.constant 0 : index
    %10 = vector.load %arg6[%c0_8, %c0_9] : memref<4x256xf32, #tpu.memory_space<vmem>>, vector<4x256xf32>
    %11 = arith.mulf %5, %5 : vector<2x4x256xf32>
    %cst_10 = arith.constant dense<0.000000e+00> : vector<4x256xf32>
    %12 = vector.multi_reduction <add>, %11, %cst_10 [0] : vector<2x4x256xf32> to vector<4x256xf32>
    %13 = arith.addf %10, %12 : vector<4x256xf32>
    %c0_11 = arith.constant 0 : index
    %c0_12 = arith.constant 0 : index
    %14 = vector.load %arg6[%c0_11, %c0_12] : memref<4x256xf32, #tpu.memory_space<vmem>>, vector<4x256xf32>
    tpu.vector_store %arg6[%c0_11, %c0_12], %13 {strides = array<i32>} : memref<4x256xf32, #tpu.memory_space<vmem>>, vector<4x256xf32>,
    %c0_i32_13 = arith.constant 0 : i32
    %15 = arith.cmpi eq, %arg0, %c0_i32_13 : i32
    %c0_i32_14 = arith.constant 0 : i32
    %16 = arith.cmpi eq, %arg1, %c0_i32_14 : i32
    %17 = arith.andi %15, %16 : i1
    %18 = arith.extui %17 : i1 to i32
    %c0_i32_15 = arith.constant 0 : i32
    %19 = arith.cmpi ne, %18, %c0_i32_15 : i32
    scf.if %19 {
      %c0_16 = arith.constant 0 : index
      %c0_17 = arith.constant 0 : index
      %20 = vector.load %arg5[%c0_16, %c0_17] : memref<4x256xf32, #tpu.memory_space<vmem>>, vector<4x256xf32>
      %cst_18 = arith.constant dense<0.000000e+00> : vector<4xf32>
      %21 = vector.multi_reduction <add>, %20, %cst_18 [1] : vector<4x256xf32> to vector<4xf32>
      %22 = vector.shape_cast %21 : vector<4xf32> to vector<4x1xf32>
      %c0_19 = arith.constant 0 : index
      %c0_20 = arith.constant 0 : index
      %23 = vector.load %arg3[%c0_19, %c0_20] : memref<4x1xf32, #tpu.memory_space<vmem>>, vector<4x1xf32>
      tpu.vector_store %arg3[%c0_19, %c0_20], %22 {strides = array<i32>} : memref<4x1xf32, #tpu.memory_space<vmem>>, vector<4x1xf32>,
      %c0_21 = arith.constant 0 : index
      %c0_22 = arith.constant 0 : index
      %24 = vector.load %arg6[%c0_21, %c0_22] : memref<4x256xf32, #tpu.memory_space<vmem>>, vector<4x256xf32>
      %cst_23 = arith.constant dense<0.000000e+00> : vector<4xf32>
      %25 = vector.multi_reduction <add>, %24, %cst_23 [1] : vector<4x256xf32> to vector<4xf32>
      %26 = vector.shape_cast %25 : vector<4xf32> to vector<4x1xf32>
      %c0_24 = arith.constant 0 : index
      %c0_25 = arith.constant 0 : index
      %27 = vector.load %arg4[%c0_24, %c0_25] : memref<4x1xf32, #tpu.memory_space<vmem>>, vector<4x1xf32>
      tpu.vector_store %arg4[%c0_24, %c0_25], %26 {strides = array<i32>} : memref<4x1xf32, #tpu.memory_space<vmem>>, vector<4x1xf32>,
    } else {
    }
    return
  }
  func.func @transform_0(%arg0: i32, %arg1: i32) -> (i32, i32, i32) {
    %c0_i32 = arith.constant 0 : i32
    %c0_i32_0 = arith.constant 0 : i32
    return %arg0, %c0_i32, %arg1 : i32, i32, i32
  }
  func.func @transform_1(%arg0: i32, %arg1: i32) -> (i32, i32) {
    %c0_i32 = arith.constant 0 : i32
    %c0_i32_0 = arith.constant 0 : i32
    %c0_i32_1 = arith.constant 0 : i32
    return %c0_i32, %c0_i32_0 : i32, i32
  }
  func.func @transform_2(%arg0: i32, %arg1: i32) -> (i32, i32) {
    %c0_i32 = arith.constant 0 : i32
    %c0_i32_0 = arith.constant 0 : i32
    %c0_i32_1 = arith.constant 0 : i32
    return %c0_i32, %c0_i32_0 : i32, i32
  }
}

</mosaic_0001>

<bundles_post_ra>
// kernel: tpu_custom_call.1
= control target key start
LH: loop header
LB: loop body
LE: loop exit
PB: predicated region body
PF: predicated region fallthrough
CT: control target
= control target key end

     0   :  { %8 = vsyncpa [#allocation5], 0  ;;  %s138_s9 = smov [#allocation4]   ;;  %s186_s0 = inlined_call_operand.hbm [shape: f32[2,4,256], index: 0, kind: input, shape index: {}]   ;;  %s187_s1 = inlined_call_operand.vmem [shape: f32[4,1], index: 1, kind: output, shape index: {0}]   ;;  %s188_s2 = inlined_call_operand.vmem [shape: f32[4,1], index: 2, kind: output, shape index: {1}]  }
   0x1   :  { %s14_s10 = sshll.u32 %s138_s9, 4  ;;  %s114_s13 = scalar_lea.hbm %s186_s0, 256  ;;  %s15_s10 = int_to_ptr.vmem [resolvable:$true] %s14_s10 }
   0x2   :  { %p115_p0 = scmp.ne.s32.totalorder %s186_s0, %s114_s13  ;;  %p118_p1 = scmp.lt.u32.totalorder %s114_s13, %s186_s0 }
   0x4   :  { %p120_p2 = pnand %p118_p1, %p115_p0 }
   0x6   :  { %123 = shalt.err (!%p120_p2)
}
   0x7   :  { %s124_s18 = scalar_lea.vmem %s15_s10, 256  ;;  %p129_p4 = scmp.lt.s32.totalorder %s15_s10, %s15_s10 }
   0x8   :  { %p125_p3 = scmp.ne.s32.totalorder %s15_s10, %s124_s18  ;;  %p130_p5 = scmp.lt.s32.totalorder %s124_s18, %s124_s18 }
   0xa   :  { %p131_p6 = por %p130_p5, %p129_p4 }
   0xc   :  { %p132_p7 = pnand %p131_p6, %p125_p3 }
   0xe   :  { %135 = shalt.err (!%p132_p7)
}
   0xf   :  { %s139_s19 = smov 128   ;;  %s140_s20 = smov 8  }
  0x10   :  { %20 = dma.hbm_to_vmem [thread:$0]  %s186_s0, 256, %s15_s10, [#allocation5], %s139_s19, %s139_s19, %s140_s20  }
  0x11   :  { %136 = dma.done.wait [#allocation5], 256  }
  0x12   :  { %137 = vsyncadd [#allocation5], 4294967040  ;;  %vm41_vm0 = vcmask 1043456   ;;  %v32_v0 = vld [vmem:[#allocation4] sm:$0xff]  ;;  %v33_v1 = vld [vmem:[#allocation4 + $0x8] sm:$0xff]  ;;  %vm86_vm1 = vcmask 3072  }
  0x13   :  { %v37_v2 = vcombine.high %v32_v0, %v32_v0  ;;  %v38_v3 = vcombine.high %v33_v1, %v33_v1  ;;  %v42_v4 = vsel %vm41_vm0, %v32_v0, 0.0  ;;  %v43_v5 = vsel %vm41_vm0, %v33_v1, 0.0 }
  0x14   :  { %v44_v6 = vadd.f32 %v43_v5, %v42_v4  ;;  %v55_v7 = vmul.f32 %v32_v0, %v32_v0  ;;  %v56_v8 = vmul.f32 %v33_v1, %v33_v1 }
  0x15   :  { %v45_v9 = vsel %vm41_vm0, %v37_v2, 0.0  ;;  %v46_v10 = vsel %vm41_vm0, %v38_v3, 0.0 }
  0x16   :  { %v47_v11 = vadd.f32 %v46_v10, %v45_v9  ;;  %v59_v12 = vcombine.high %v55_v7, %v55_v7  ;;  %v60_v13 = vcombine.high %v56_v8, %v56_v8  ;;  %v63_v14 = vsel %vm41_vm0, %v55_v7, 0.0 }
  0x17   :  { %v64_v15 = vsel %vm41_vm0, %v56_v8, 0.0 }
  0x18   :  { %v50_v16 = vcombine.low %v44_v6, %v47_v11  ;;  %v107_v17 = vcombine.low %v47_v11, %v47_v11  ;;  %v65_v18 = vadd.f32 %v64_v15, %v63_v14  ;;  %v66_v19 = vsel %vm41_vm0, %v59_v12, 0.0 }
  0x19   :  { %v67_v20 = vsel %vm41_vm0, %v60_v13, 0.0 }
  0x1a   :  { %v81_v21 = vsel %vm41_vm0, %v50_v16, 0.0  ;;  %v82_v22 = vsel %vm41_vm0, %v107_v17, 0.0  ;;  %v68_v23 = vadd.f32 %v67_v20, %v66_v19 }
  0x1b   :  { %v83_v24 = vadd.f32 %v82_v22, %v81_v21 }
  0x1c   :  { %v71_v25 = vcombine.low %v65_v18, %v68_v23  ;;  %v108_v26 = vcombine.low %v68_v23, %v68_v23 }
  0x1d   :  { %84 = vadd.xlane.f32.xlu0 %v83_v24 }
  0x1e   :  { %v92_v27 = vsel %vm41_vm0, %v71_v25, 0.0  ;;  %v93_v28 = vsel %vm41_vm0, %v108_v26, 0.0 }
  0x1f   :  { %v94_v29 = vadd.f32 %v93_v28, %v92_v27 }
  0x21   :  { %95 = vadd.xlane.f32.xlu0 %v94_v29 }
  0xaa   :  { %v85_v30 = vpop.xlane.xlu0 %84 }
  0xab   :  { %87 = vst.msk [vmem:[%s187_s1] sm:$0xf] %vm86_vm1, %v85_v30 }
  0xae   :  { %v96_v31 = vpop.xlane.xlu0 %95 }
  0xaf   :  { %97 = vst.msk [vmem:[%s188_s2] sm:$0xf] %vm86_vm1, %v96_v31 }
  0xb0   :  { %106 = vsyncpa [#allocation5], 1 }

</bundles_post_ra>
